<compile_context>
chip_gen: v6e
topology: v6e:2x2x1
jax: 0.10.0
libtpu: 0.0.40
codegen_flags: <defaults>
</compile_context>

<pallas_src>
import jax
import jax.numpy as jnp
from jax.experimental import pallas as pl
from jax.experimental.pallas import tpu as pltpu


# ---------------------------------------------------------------------------
# Pallas kernel: a tile of `bt` batch elements per grid step, full block in-kernel
# ---------------------------------------------------------------------------
def mpnn_block_kernel(h_ref, e_ref, adj_ref, w3ab_ref,
                      wf1_ref, whh1_ref, bm1_ref, bih1_ref, bhh1_ref,
                      wf2_ref, whh2_ref, bm2_ref, bih2_ref, bhh2_ref,
                      out_ref):
    bt, n, _ = adj_ref.shape
    h_dim = out_ref.shape[-1]
    m_dim = bm1_ref.shape[-1]          # == h_dim for this module
    inv_n = 1.0 / float(n)

    h = h_ref[...]                     # (bt*n, H)   rows flattened across the batch tile
    adj = adj_ref[...]                 # (bt, n, n)
    e = e_ref[...]                     # (bt, n, n, E)

    # ---- layer-independent precompute: touch e exactly once --------------
    deg = jnp.sum(adj, axis=2, keepdims=True)                        # (bt, n, 1)
    agg_e = jnp.sum(adj[..., None] * e, axis=2)                      # (bt, n, E)
    # both layers' edge projections in one lane-wider matmul (E -> 2M)
    ce_both = jnp.dot(agg_e.reshape(bt * n, agg_e.shape[-1]), w3ab_ref[...],
                      preferred_element_type=jnp.float32)            # (bt*n, 2M)
    ce1 = ce_both[:, :m_dim].reshape(bt, n, m_dim)
    ce2 = ce_both[:, m_dim:].reshape(bt, n, m_dim)

    def layer(x, ce, wf, whh, b_m, b_ih, b_hh):
        # x: (bt*n, H).  wf = [w1 | w2 | W_ih^T] fused, shape (H, 2M+3H).
        hw = jnp.dot(x, wf, preferred_element_type=jnp.float32)      # (bt*n, 2M+3H)
        a3 = hw[:, :m_dim].reshape(bt, n, m_dim)                     # term from h[j]
        c3 = hw[:, m_dim:2 * m_dim].reshape(bt, n, m_dim)            # term from h[i]
        gi = hw[:, 2 * m_dim:] + b_ih                                # (bt*n, 3H)

        # masked mean over j, factored through the linear fc_m (divide by N, not deg,
        # to match the reference's plain mean).
        adj_a = jnp.einsum('bij,bjm->bim', adj, a3,
                           preferred_element_type=jnp.float32)       # (bt, n, M)
        m_bar = (adj_a + deg * (c3 + b_m) + ce) * inv_n              # (bt, n, M)
        m_bar = m_bar.reshape(bt * n, m_dim)

        # GRUCell(input=x, hidden=m_bar)  (PyTorch gate order r, z, n)
        gh = jnp.dot(m_bar, whh, preferred_element_type=jnp.float32) + b_hh
        r = jax.nn.sigmoid(gi[:, :h_dim] + gh[:, :h_dim])
        z = jax.nn.sigmoid(gi[:, h_dim:2 * h_dim] + gh[:, h_dim:2 * h_dim])
        ng = jnp.tanh(gi[:, 2 * h_dim:] + r * gh[:, 2 * h_dim:])
        return (1.0 - z) * ng + z * m_bar

    h1 = layer(h, ce1, wf1_ref[...], whh1_ref[...], bm1_ref[...],
               bih1_ref[...], bhh1_ref[...])
    h2 = layer(h1, ce2, wf2_ref[...], whh2_ref[...], bm2_ref[...],
               bih2_ref[...], bhh2_ref[...])
    out_ref[...] = h + h2   # residual of MPNNBlock
    # NOTE: output last dim is H (<128) -> masked stores; at realistic sizes consider a
    # wrapper-side (Bt, N*H) repack.  bf16 operands would further speed v6e/v7x MXU use.


def _full_spec(w):
    nd = w.ndim
    return pl.BlockSpec(w.shape, lambda b, _nd=nd: (0,) * _nd)


def _pick_batch_tile(B, N, E):
    """Batch elements per grid step: fill MXU rows / amortize step overhead,
    while keeping the double-buffered e block well inside v7x's 64 MiB VMEM."""
    vmem_budget = 8 << 20                       # per-buffer budget for the e block
    e_bytes = max(1, N * N * E * 4)
    cap = max(1, vmem_budget // e_bytes)
    want_rows = 256                              # >= 2x MXU rows
    want = max(1, min(B, cap, -(-want_rows // N)))
    bt = 1
    for d in range(1, B + 1):                    # largest divisor of B <= want
        if B % d == 0 and d <= want:
            bt = d
    # prefer >=2 grid steps (v7x megacore) if it does not starve the MXU of rows
    if B // bt == 1 and bt > 1:
        for d in range(bt - 1, 0, -1):
            if B % d == 0 and d * N >= 128:
                bt = d
                break
    return bt


def mpnn_block(h, e, adj, layer1_params, layer2_params, *, batch_tile=None):
    B, N, H = h.shape
    E = e.shape[-1]
    (wf1, whh1, w31, bm1, bih1, bhh1) = layer1_params
    (wf2, whh2, w32, bm2, bih2, bhh2) = layer2_params
    M = bm1.shape[-1]

    bt = batch_tile if batch_tile is not None else _pick_batch_tile(B, N, E)
    assert B % bt == 0, "batch tile must divide batch"
    grid = (B // bt,)

    # fuse both layers' edge-projection weights -> single pass over the edge aggregate
    w3ab = jnp.concatenate([w31, w32], axis=1)          # (E, 2M)

    # flatten (B, N) rows outside the kernel so matmul blocks are row-dense
    h2d = h.reshape(B * N, H)
    weights = (w3ab, wf1, whh1, bm1, bih1, bhh1, wf2, whh2, bm2, bih2, bhh2)

    grid_spec = pltpu.PrefetchScalarGridSpec(
        num_scalar_prefetch=0,
        grid=grid,
        in_specs=[
            pl.BlockSpec((bt * N, H), lambda b: (b, 0)),
            # TODO(synk): e's trailing dim (E) is lane-sparse; for large E pack it into a
            # 128-multiple trailing dim to cut VMEM/DMA padding.
            pl.BlockSpec((bt, N, N, E), lambda b: (b, 0, 0, 0)),
            pl.BlockSpec((bt, N, N), lambda b: (b, 0, 0)),
            *[_full_spec(w) for w in weights],
        ],
        out_specs=pl.BlockSpec((bt * N, H), lambda b: (b, 0)),
    )
    out = pl.pallas_call(
        mpnn_block_kernel,
        out_shape=jax.ShapeDtypeStruct((B * N, H), jnp.float32),
        grid_spec=grid_spec,
        compiler_params=pltpu.CompilerParams(
            dimension_semantics=("parallel",)),
    )(h2d, e, adj, *weights)
    return out.reshape(B, N, H)


# ---------------------------------------------------------------------------
# Deterministic parameter construction (PyTorch-default-style uniform init)
# ---------------------------------------------------------------------------
def init_layer_params(key, h_dim, e_dim):
    M = h_dim
    in_dim = 2 * h_dim + e_dim
    ks = jax.random.split(key, 6)
    k_m = 1.0 / jnp.sqrt(in_dim)
    k_g = 1.0 / jnp.sqrt(h_dim)
    Wm = jax.random.uniform(ks[0], (M, in_dim), jnp.float32, -k_m, k_m)
    bm = jax.random.uniform(ks[1], (M,), jnp.float32, -k_m, k_m)
    Wih = jax.random.uniform(ks[2], (3 * h_dim, h_dim), jnp.float32, -k_g, k_g)
    Whh = jax.random.uniform(ks[3], (3 * h_dim, h_dim), jnp.float32, -k_g, k_g)
    bih = jax.random.uniform(ks[4], (3 * h_dim,), jnp.float32, -k_g, k_g)
    bhh = jax.random.uniform(ks[5], (3 * h_dim,), jnp.float32, -k_g, k_g)
    # TODO(synk): fc_h in MPNNLayer is unused in the reference forward pass; omitted.
    raw = (Wm, bm, Wih, Whh, bih, bhh)

    # kernel-side layout: pre-transposed, fc_m weight split by concat segment, and all
    # h-LHS matrices (w1, w2, W_ih) fused into one lane-dense weight.
    w1_t = Wm[:, :h_dim].T                       # (H, M) -- acts on h[j]
    w2_t = Wm[:, h_dim:2 * h_dim].T              # (H, M) -- acts on h[i]
    w3_t = Wm[:, 2 * h_dim:].T                   # (E, M) -- acts on e[i, j]
    wf = jnp.concatenate([w1_t, w2_t, Wih.T], axis=1)   # (H, 2M + 3H)
    kernel_params = (
        wf,
        Whh.T,                                   # (H, 3H)
        w3_t,                                    # (E, M)
        bm.reshape(1, M),
        bih.reshape(1, 3 * h_dim),
        bhh.reshape(1, 3 * h_dim),
    )
    return raw, kernel_params


# ---------------------------------------------------------------------------
# Pure-JAX reference (mirrors the PyTorch forward literally) for sanity check
# ---------------------------------------------------------------------------
def ref_layer(h, e, adj, raw):
    Wm, bm, Wih, Whh, bih, bhh = raw
    B, N, H = h.shape
    h_rep1 = jnp.broadcast_to(h[:, None, :, :], (B, N, N, H))   # [b,i,j] = h[b,j]
    h_rep2 = jnp.broadcast_to(h[:, :, None, :], (B, N, N, H))   # [b,i,j] = h[b,i]
    cat = jnp.concatenate([h_rep1, h_rep2, e], axis=3)
    m = cat @ Wm.T + bm
    m = m * adj[..., None]
    m_bar = m.mean(axis=2)
    x = h.reshape(-1, H)
    hid = m_bar.reshape(-1, H)
    gi = x @ Wih.T + bih
    gh = hid @ Whh.T + bhh
    r = jax.nn.sigmoid(gi[:, :H] + gh[:, :H])
    z = jax.nn.sigmoid(gi[:, H:2 * H] + gh[:, H:2 * H])
    n = jnp.tanh(gi[:, 2 * H:] + r * gh[:, 2 * H:])
    return ((1.0 - z) * n + z * hid).reshape(B, N, H)


def ref_block(h, e, adj, raw1, raw2):
    h1 = ref_layer(h, e, adj, raw1)
    h2 = ref_layer(h1, e, adj, raw2)
    return h + h2


if __name__ == "__main__":
    B, N, H, E = 2, 8, 32, 16

    key = jax.random.PRNGKey(0)
    k_h, k_e, k_adj, k_p1, k_p2 = jax.random.split(key, 5)

    h = jax.random.normal(k_h, (B, N, H), jnp.float32)
    e = jax.random.normal(k_e, (B, N, N, E), jnp.float32)
    adj = (jax.random.uniform(k_adj, (B, N, N)) > 0.5).astype(jnp.float32)

    raw1, kp1 = init_layer_params(k_p1, H, E)
    raw2, kp2 = init_layer_params(k_p2, H, E)

    out = mpnn_block(h, e, adj, kp1, kp2)
    out = jax.block_until_ready(out)

    expected = ref_block(h, e, adj, raw1, raw2)
    assert out.shape == (B, N, H)
    assert jnp.allclose(out, expected, atol=1e-4, rtol=1e-4), (
        float(jnp.max(jnp.abs(out - expected))))

    print("KERNEL_OK")
</pallas_src>

<mosaic_0001>
module attributes {stable_mosaic.version = 11 : i64} {
  func.func @mpnn_block_kernel(%arg0: i32, %arg1: memref<16x32xf32, #tpu.memory_space<vmem>>, %arg2: memref<2x8x8x16xf32, #tpu.memory_space<vmem>>, %arg3: memref<2x8x8xf32, #tpu.memory_space<vmem>>, %arg4: memref<16x64xf32, #tpu.memory_space<vmem>>, %arg5: memref<32x160xf32, #tpu.memory_space<vmem>>, %arg6: memref<32x96xf32, #tpu.memory_space<vmem>>, %arg7: memref<1x32xf32, #tpu.memory_space<vmem>>, %arg8: memref<1x96xf32, #tpu.memory_space<vmem>>, %arg9: memref<1x96xf32, #tpu.memory_space<vmem>>, %arg10: memref<32x160xf32, #tpu.memory_space<vmem>>, %arg11: memref<32x96xf32, #tpu.memory_space<vmem>>, %arg12: memref<1x32xf32, #tpu.memory_space<vmem>>, %arg13: memref<1x96xf32, #tpu.memory_space<vmem>>, %arg14: memref<1x96xf32, #tpu.memory_space<vmem>>, %arg15: memref<16x32xf32, #tpu.memory_space<vmem>>) attributes {dimension_semantics = [#tpu.dimension_semantics<parallel>], iteration_bounds = array<i64: 1>, scalar_prefetch = 0 : i64, scratch_operands = 0 : i64, tpu.core_type = #tpu.core_type<tc>, window_params = [{transform_indices = @transform_0, window_bounds = array<i64: 16, 32>}, {transform_indices = @transform_1, window_bounds = array<i64: 2, 8, 8, 16>}, {transform_indices = @transform_2, window_bounds = array<i64: 2, 8, 8>}, {pipeline_mode = #tpu.pipeline_mode<synchronous>, transform_indices = @transform_3, window_bounds = array<i64: 16, 64>}, {pipeline_mode = #tpu.pipeline_mode<synchronous>, transform_indices = @transform_4, window_bounds = array<i64: 32, 160>}, {pipeline_mode = #tpu.pipeline_mode<synchronous>, transform_indices = @transform_5, window_bounds = array<i64: 32, 96>}, {pipeline_mode = #tpu.pipeline_mode<synchronous>, transform_indices = @transform_6, window_bounds = array<i64: 1, 32>}, {pipeline_mode = #tpu.pipeline_mode<synchronous>, transform_indices = @transform_7, window_bounds = array<i64: 1, 96>}, {pipeline_mode = #tpu.pipeline_mode<synchronous>, transform_indices = @transform_8, window_bounds = array<i64: 1, 96>}, {pipeline_mode = #tpu.pipeline_mode<synchronous>, transform_indices = @transform_9, window_bounds = array<i64: 32, 160>}, {pipeline_mode = #tpu.pipeline_mode<synchronous>, transform_indices = @transform_10, window_bounds = array<i64: 32, 96>}, {pipeline_mode = #tpu.pipeline_mode<synchronous>, transform_indices = @transform_11, window_bounds = array<i64: 1, 32>}, {pipeline_mode = #tpu.pipeline_mode<synchronous>, transform_indices = @transform_12, window_bounds = array<i64: 1, 96>}, {pipeline_mode = #tpu.pipeline_mode<synchronous>, transform_indices = @transform_13, window_bounds = array<i64: 1, 96>}, {transform_indices = @transform_14, window_bounds = array<i64: 16, 32>}]} {
    %c0 = arith.constant 0 : index
    %c0_0 = arith.constant 0 : index
    %0 = vector.load %arg1[%c0, %c0_0] : memref<16x32xf32, #tpu.memory_space<vmem>>, vector<16x32xf32>
    %c0_1 = arith.constant 0 : index
    %c0_2 = arith.constant 0 : index
    %c0_3 = arith.constant 0 : index
    %1 = vector.load %arg3[%c0_1, %c0_2, %c0_3] : memref<2x8x8xf32, #tpu.memory_space<vmem>>, vector<2x8x8xf32>
    %c0_4 = arith.constant 0 : index
    %c0_5 = arith.constant 0 : index
    %c0_6 = arith.constant 0 : index
    %c0_7 = arith.constant 0 : index
    %2 = vector.load %arg2[%c0_4, %c0_5, %c0_6, %c0_7] : memref<2x8x8x16xf32, #tpu.memory_space<vmem>>, vector<2x8x8x16xf32>
    %cst = arith.constant dense<0.000000e+00> : vector<2x8xf32>
    %3 = vector.multi_reduction <add>, %1, %cst [2] : vector<2x8x8xf32> to vector<2x8xf32>
    %4 = vector.shape_cast %3 : vector<2x8xf32> to vector<2x8x1xf32>
    %5 = vector.shape_cast %1 : vector<2x8x8xf32> to vector<2x8x8x1xf32>
    %6 = vector.broadcast %5 : vector<2x8x8x1xf32> to vector<2x8x8x16xf32>
    %7 = arith.mulf %6, %2 : vector<2x8x8x16xf32>
    %cst_8 = arith.constant dense<0.000000e+00> : vector<2x8x16xf32>
    %8 = vector.multi_reduction <add>, %7, %cst_8 [2] : vector<2x8x8x16xf32> to vector<2x8x16xf32>
    %9 = vector.shape_cast %8 : vector<2x8x16xf32> to vector<16x16xf32>
    %c0_9 = arith.constant 0 : index
    %c0_10 = arith.constant 0 : index
    %10 = vector.load %arg4[%c0_9, %c0_10] : memref<16x64xf32, #tpu.memory_space<vmem>>, vector<16x64xf32>
    %cst_11 = arith.constant dense<0.000000e+00> : vector<16x64xf32>
    %11 = tpu.matmul %9, %10, %cst_11 {dimension_numbers = #tpu.dot_dimension_numbers<[1], [0], [0], [1], [0, 0, 1, 1], [], []>} : vector<16x16xf32>, vector<16x64xf32>, vector<16x64xf32> -> vector<16x64xf32>
    %12 = vector.extract_strided_slice %11 {offsets = [0, 0], sizes = [16, 32], strides = [1, 1]} : vector<16x64xf32> to vector<16x32xf32>
    %13 = vector.shape_cast %12 : vector<16x32xf32> to vector<2x8x32xf32>
    %14 = vector.extract_strided_slice %11 {offsets = [0, 32], sizes = [16, 32], strides = [1, 1]} : vector<16x64xf32> to vector<16x32xf32>
    %15 = vector.shape_cast %14 : vector<16x32xf32> to vector<2x8x32xf32>
    %c0_12 = arith.constant 0 : index
    %c0_13 = arith.constant 0 : index
    %16 = vector.load %arg5[%c0_12, %c0_13] : memref<32x160xf32, #tpu.memory_space<vmem>>, vector<32x160xf32>
    %c0_14 = arith.constant 0 : index
    %c0_15 = arith.constant 0 : index
    %17 = vector.load %arg6[%c0_14, %c0_15] : memref<32x96xf32, #tpu.memory_space<vmem>>, vector<32x96xf32>
    %c0_16 = arith.constant 0 : index
    %c0_17 = arith.constant 0 : index
    %18 = vector.load %arg7[%c0_16, %c0_17] : memref<1x32xf32, #tpu.memory_space<vmem>>, vector<1x32xf32>
    %c0_18 = arith.constant 0 : index
    %c0_19 = arith.constant 0 : index
    %19 = vector.load %arg8[%c0_18, %c0_19] : memref<1x96xf32, #tpu.memory_space<vmem>>, vector<1x96xf32>
    %c0_20 = arith.constant 0 : index
    %c0_21 = arith.constant 0 : index
    %20 = vector.load %arg9[%c0_20, %c0_21] : memref<1x96xf32, #tpu.memory_space<vmem>>, vector<1x96xf32>
    %cst_22 = arith.constant dense<0.000000e+00> : vector<16x160xf32>
    %21 = tpu.matmul %0, %16, %cst_22 {dimension_numbers = #tpu.dot_dimension_numbers<[1], [0], [0], [1], [0, 0, 1, 1], [], []>} : vector<16x32xf32>, vector<32x160xf32>, vector<16x160xf32> -> vector<16x160xf32>
    %22 = vector.extract_strided_slice %21 {offsets = [0, 0], sizes = [16, 32], strides = [1, 1]} : vector<16x160xf32> to vector<16x32xf32>
    %23 = vector.shape_cast %22 : vector<16x32xf32> to vector<2x8x32xf32>
    %24 = vector.extract_strided_slice %21 {offsets = [0, 32], sizes = [16, 32], strides = [1, 1]} : vector<16x160xf32> to vector<16x32xf32>
    %25 = vector.shape_cast %24 : vector<16x32xf32> to vector<2x8x32xf32>
    %26 = vector.extract_strided_slice %21 {offsets = [0, 64], sizes = [16, 96], strides = [1, 1]} : vector<16x160xf32> to vector<16x96xf32>
    %27 = vector.broadcast %19 : vector<1x96xf32> to vector<16x96xf32>
    %28 = arith.addf %26, %27 : vector<16x96xf32>
    "tpu.trace_start"() <{level = 10 : i32, message = "bij,bjm->bim"}> : () -> ()
    %cst_23 = arith.constant dense<0.000000e+00> : vector<2x8x32xf32>
    %29 = tpu.matmul %1, %23, %cst_23 {dimension_numbers = #tpu.dot_dimension_numbers<[2], [1], [1], [2], [0, 0, 0, 1, 1, 2], [0], [0]>} : vector<2x8x8xf32>, vector<2x8x32xf32>, vector<2x8x32xf32> -> vector<2x8x32xf32>
    "tpu.trace_stop"() : () -> ()
    %30 = vector.shape_cast %18 : vector<1x32xf32> to vector<1x1x32xf32>
    %31 = vector.broadcast %30 : vector<1x1x32xf32> to vector<2x8x32xf32>
    %32 = arith.addf %25, %31 : vector<2x8x32xf32>
    %33 = vector.broadcast %4 : vector<2x8x1xf32> to vector<2x8x32xf32>
    %34 = arith.mulf %33, %32 : vector<2x8x32xf32>
    %35 = arith.addf %29, %34 : vector<2x8x32xf32>
    %36 = arith.addf %35, %13 : vector<2x8x32xf32>
    %cst_24 = arith.constant 1.250000e-01 : f32
    %37 = vector.broadcast %cst_24 : f32 to vector<2x8x32xf32>
    %38 = arith.mulf %36, %37 : vector<2x8x32xf32>
    %39 = vector.shape_cast %38 : vector<2x8x32xf32> to vector<16x32xf32>
    %cst_25 = arith.constant dense<0.000000e+00> : vector<16x96xf32>
    %40 = tpu.matmul %39, %17, %cst_25 {dimension_numbers = #tpu.dot_dimension_numbers<[1], [0], [0], [1], [0, 0, 1, 1], [], []>} : vector<16x32xf32>, vector<32x96xf32>, vector<16x96xf32> -> vector<16x96xf32>
    %41 = vector.broadcast %20 : vector<1x96xf32> to vector<16x96xf32>
    %42 = arith.addf %40, %41 : vector<16x96xf32>
    %43 = vector.extract_strided_slice %28 {offsets = [0, 0], sizes = [16, 32], strides = [1, 1]} : vector<16x96xf32> to vector<16x32xf32>
    %44 = vector.extract_strided_slice %42 {offsets = [0, 0], sizes = [16, 32], strides = [1, 1]} : vector<16x96xf32> to vector<16x32xf32>
    %45 = arith.addf %43, %44 : vector<16x32xf32>
    %46 = arith.negf %45 : vector<16x32xf32>
    %47 = math.exp %46 : vector<16x32xf32>
    %cst_26 = arith.constant 1.000000e+00 : f32
    %48 = vector.broadcast %cst_26 : f32 to vector<16x32xf32>
    %49 = arith.addf %48, %47 : vector<16x32xf32>
    %50 = arith.divf %48, %49 : vector<16x32xf32>
    %51 = vector.extract_strided_slice %28 {offsets = [0, 32], sizes = [16, 32], strides = [1, 1]} : vector<16x96xf32> to vector<16x32xf32>
    %52 = vector.extract_strided_slice %42 {offsets = [0, 32], sizes = [16, 32], strides = [1, 1]} : vector<16x96xf32> to vector<16x32xf32>
    %53 = arith.addf %51, %52 : vector<16x32xf32>
    %54 = arith.negf %53 : vector<16x32xf32>
    %55 = math.exp %54 : vector<16x32xf32>
    %cst_27 = arith.constant 1.000000e+00 : f32
    %56 = vector.broadcast %cst_27 : f32 to vector<16x32xf32>
    %57 = arith.addf %56, %55 : vector<16x32xf32>
    %58 = arith.divf %56, %57 : vector<16x32xf32>
    %59 = vector.extract_strided_slice %28 {offsets = [0, 64], sizes = [16, 32], strides = [1, 1]} : vector<16x96xf32> to vector<16x32xf32>
    %60 = vector.extract_strided_slice %42 {offsets = [0, 64], sizes = [16, 32], strides = [1, 1]} : vector<16x96xf32> to vector<16x32xf32>
    %61 = arith.mulf %50, %60 : vector<16x32xf32>
    %62 = arith.addf %59, %61 : vector<16x32xf32>
    %63 = math.tanh %62 : vector<16x32xf32>
    %cst_28 = arith.constant 1.000000e+00 : f32
    %64 = vector.broadcast %cst_28 : f32 to vector<16x32xf32>
    %65 = arith.subf %64, %58 : vector<16x32xf32>
    %66 = arith.mulf %65, %63 : vector<16x32xf32>
    %67 = arith.mulf %58, %39 : vector<16x32xf32>
    %68 = arith.addf %66, %67 : vector<16x32xf32>
    %c0_29 = arith.constant 0 : index
    %c0_30 = arith.constant 0 : index
    %69 = vector.load %arg10[%c0_29, %c0_30] : memref<32x160xf32, #tpu.memory_space<vmem>>, vector<32x160xf32>
    %c0_31 = arith.constant 0 : index
    %c0_32 = arith.constant 0 : index
    %70 = vector.load %arg11[%c0_31, %c0_32] : memref<32x96xf32, #tpu.memory_space<vmem>>, vector<32x96xf32>
    %c0_33 = arith.constant 0 : index
    %c0_34 = arith.constant 0 : index
    %71 = vector.load %arg12[%c0_33, %c0_34] : memref<1x32xf32, #tpu.memory_space<vmem>>, vector<1x32xf32>
    %c0_35 = arith.constant 0 : index
    %c0_36 = arith.constant 0 : index
    %72 = vector.load %arg13[%c0_35, %c0_36] : memref<1x96xf32, #tpu.memory_space<vmem>>, vector<1x96xf32>
    %c0_37 = arith.constant 0 : index
    %c0_38 = arith.constant 0 : index
    %73 = vector.load %arg14[%c0_37, %c0_38] : memref<1x96xf32, #tpu.memory_space<vmem>>, vector<1x96xf32>
    %cst_39 = arith.constant dense<0.000000e+00> : vector<16x160xf32>
    %74 = tpu.matmul %68, %69, %cst_39 {dimension_numbers = #tpu.dot_dimension_numbers<[1], [0], [0], [1], [0, 0, 1, 1], [], []>} : vector<16x32xf32>, vector<32x160xf32>, vector<16x160xf32> -> vector<16x160xf32>
    %75 = vector.extract_strided_slice %74 {offsets = [0, 0], sizes = [16, 32], strides = [1, 1]} : vector<16x160xf32> to vector<16x32xf32>
    %76 = vector.shape_cast %75 : vector<16x32xf32> to vector<2x8x32xf32>
    %77 = vector.extract_strided_slice %74 {offsets = [0, 32], sizes = [16, 32], strides = [1, 1]} : vector<16x160xf32> to vector<16x32xf32>
    %78 = vector.shape_cast %77 : vector<16x32xf32> to vector<2x8x32xf32>
    %79 = vector.extract_strided_slice %74 {offsets = [0, 64], sizes = [16, 96], strides = [1, 1]} : vector<16x160xf32> to vector<16x96xf32>
    %80 = vector.broadcast %72 : vector<1x96xf32> to vector<16x96xf32>
    %81 = arith.addf %79, %80 : vector<16x96xf32>
    "tpu.trace_start"() <{level = 10 : i32, message = "bij,bjm->bim"}> : () -> ()
    %cst_40 = arith.constant dense<0.000000e+00> : vector<2x8x32xf32>
    %82 = tpu.matmul %1, %76, %cst_40 {dimension_numbers = #tpu.dot_dimension_numbers<[2], [1], [1], [2], [0, 0, 0, 1, 1, 2], [0], [0]>} : vector<2x8x8xf32>, vector<2x8x32xf32>, vector<2x8x32xf32> -> vector<2x8x32xf32>
    "tpu.trace_stop"() : () -> ()
    %83 = vector.shape_cast %71 : vector<1x32xf32> to vector<1x1x32xf32>
    %84 = vector.broadcast %83 : vector<1x1x32xf32> to vector<2x8x32xf32>
    %85 = arith.addf %78, %84 : vector<2x8x32xf32>
    %86 = vector.broadcast %4 : vector<2x8x1xf32> to vector<2x8x32xf32>
    %87 = arith.mulf %86, %85 : vector<2x8x32xf32>
    %88 = arith.addf %82, %87 : vector<2x8x32xf32>
    %89 = arith.addf %88, %15 : vector<2x8x32xf32>
    %cst_41 = arith.constant 1.250000e-01 : f32
    %90 = vector.broadcast %cst_41 : f32 to vector<2x8x32xf32>
    %91 = arith.mulf %89, %90 : vector<2x8x32xf32>
    %92 = vector.shape_cast %91 : vector<2x8x32xf32> to vector<16x32xf32>
    %cst_42 = arith.constant dense<0.000000e+00> : vector<16x96xf32>
    %93 = tpu.matmul %92, %70, %cst_42 {dimension_numbers = #tpu.dot_dimension_numbers<[1], [0], [0], [1], [0, 0, 1, 1], [], []>} : vector<16x32xf32>, vector<32x96xf32>, vector<16x96xf32> -> vector<16x96xf32>
    %94 = vector.broadcast %73 : vector<1x96xf32> to vector<16x96xf32>
    %95 = arith.addf %93, %94 : vector<16x96xf32>
    %96 = vector.extract_strided_slice %81 {offsets = [0, 0], sizes = [16, 32], strides = [1, 1]} : vector<16x96xf32> to vector<16x32xf32>
    %97 = vector.extract_strided_slice %95 {offsets = [0, 0], sizes = [16, 32], strides = [1, 1]} : vector<16x96xf32> to vector<16x32xf32>
    %98 = arith.addf %96, %97 : vector<16x32xf32>
    %99 = arith.negf %98 : vector<16x32xf32>
    %100 = math.exp %99 : vector<16x32xf32>
    %cst_43 = arith.constant 1.000000e+00 : f32
    %101 = vector.broadcast %cst_43 : f32 to vector<16x32xf32>
    %102 = arith.addf %101, %100 : vector<16x32xf32>
    %103 = arith.divf %101, %102 : vector<16x32xf32>
    %104 = vector.extract_strided_slice %81 {offsets = [0, 32], sizes = [16, 32], strides = [1, 1]} : vector<16x96xf32> to vector<16x32xf32>
    %105 = vector.extract_strided_slice %95 {offsets = [0, 32], sizes = [16, 32], strides = [1, 1]} : vector<16x96xf32> to vector<16x32xf32>
    %106 = arith.addf %104, %105 : vector<16x32xf32>
    %107 = arith.negf %106 : vector<16x32xf32>
    %108 = math.exp %107 : vector<16x32xf32>
    %cst_44 = arith.constant 1.000000e+00 : f32
    %109 = vector.broadcast %cst_44 : f32 to vector<16x32xf32>
    %110 = arith.addf %109, %108 : vector<16x32xf32>
    %111 = arith.divf %109, %110 : vector<16x32xf32>
    %112 = vector.extract_strided_slice %81 {offsets = [0, 64], sizes = [16, 32], strides = [1, 1]} : vector<16x96xf32> to vector<16x32xf32>
    %113 = vector.extract_strided_slice %95 {offsets = [0, 64], sizes = [16, 32], strides = [1, 1]} : vector<16x96xf32> to vector<16x32xf32>
    %114 = arith.mulf %103, %113 : vector<16x32xf32>
    %115 = arith.addf %112, %114 : vector<16x32xf32>
    %116 = math.tanh %115 : vector<16x32xf32>
    %cst_45 = arith.constant 1.000000e+00 : f32
    %117 = vector.broadcast %cst_45 : f32 to vector<16x32xf32>
    %118 = arith.subf %117, %111 : vector<16x32xf32>
    %119 = arith.mulf %118, %116 : vector<16x32xf32>
    %120 = arith.mulf %111, %92 : vector<16x32xf32>
    %121 = arith.addf %119, %120 : vector<16x32xf32>
    %122 = arith.addf %0, %121 : vector<16x32xf32>
    %c0_46 = arith.constant 0 : index
    %c0_47 = arith.constant 0 : index
    %123 = vector.load %arg15[%c0_46, %c0_47] : memref<16x32xf32, #tpu.memory_space<vmem>>, vector<16x32xf32>
    tpu.vector_store %arg15[%c0_46, %c0_47], %122 {strides = array<i32>} : memref<16x32xf32, #tpu.memory_space<vmem>>, vector<16x32xf32>,
    return
  }
  func.func @transform_0(%arg0: i32) -> (i32, i32) {
    %c0_i32 = arith.constant 0 : i32
    %c0_i32_0 = arith.constant 0 : i32
    return %arg0, %c0_i32 : i32, i32
  }
  func.func @transform_1(%arg0: i32) -> (i32, i32, i32, i32) {
    %c0_i32 = arith.constant 0 : i32
    %c0_i32_0 = arith.constant 0 : i32
    %c0_i32_1 = arith.constant 0 : i32
    %c0_i32_2 = arith.constant 0 : i32
    return %arg0, %c0_i32, %c0_i32_0, %c0_i32_1 : i32, i32, i32, i32
  }
  func.func @transform_2(%arg0: i32) -> (i32, i32, i32) {
    %c0_i32 = arith.constant 0 : i32
    %c0_i32_0 = arith.constant 0 : i32
    %c0_i32_1 = arith.constant 0 : i32
    return %arg0, %c0_i32, %c0_i32_0 : i32, i32, i32
  }
  func.func @transform_3(%arg0: i32) -> (i32, i32) {
    %c0_i32 = arith.constant 0 : i32
    %c0_i32_0 = arith.constant 0 : i32
    %c0_i32_1 = arith.constant 0 : i32
    return %c0_i32, %c0_i32_0 : i32, i32
  }
  func.func @transform_4(%arg0: i32) -> (i32, i32) {
    %c0_i32 = arith.constant 0 : i32
    %c0_i32_0 = arith.constant 0 : i32
    %c0_i32_1 = arith.constant 0 : i32
    return %c0_i32, %c0_i32_0 : i32, i32
  }
  func.func @transform_5(%arg0: i32) -> (i32, i32) {
    %c0_i32 = arith.constant 0 : i32
    %c0_i32_0 = arith.constant 0 : i32
    %c0_i32_1 = arith.constant 0 : i32
    return %c0_i32, %c0_i32_0 : i32, i32
  }
  func.func @transform_6(%arg0: i32) -> (i32, i32) {
    %c0_i32 = arith.constant 0 : i32
    %c0_i32_0 = arith.constant 0 : i32
    %c0_i32_1 = arith.constant 0 : i32
    return %c0_i32, %c0_i32_0 : i32, i32
  }
  func.func @transform_7(%arg0: i32) -> (i32, i32) {
    %c0_i32 = arith.constant 0 : i32
    %c0_i32_0 = arith.constant 0 : i32
    %c0_i32_1 = arith.constant 0 : i32
    return %c0_i32, %c0_i32_0 : i32, i32
  }
  func.func @transform_8(%arg0: i32) -> (i32, i32) {
    %c0_i32 = arith.constant 0 : i32
    %c0_i32_0 = arith.constant 0 : i32
    %c0_i32_1 = arith.constant 0 : i32
    return %c0_i32, %c0_i32_0 : i32, i32
  }
  func.func @transform_9(%arg0: i32) -> (i32, i32) {
    %c0_i32 = arith.constant 0 : i32
    %c0_i32_0 = arith.constant 0 : i32
    %c0_i32_1 = arith.constant 0 : i32
    return %c0_i32, %c0_i32_0 : i32, i32
  }
  func.func @transform_10(%arg0: i32) -> (i32, i32) {
    %c0_i32 = arith.constant 0 : i32
    %c0_i32_0 = arith.constant 0 : i32
    %c0_i32_1 = arith.constant 0 : i32
    return %c0_i32, %c0_i32_0 : i32, i32
  }
  func.func @transform_11(%arg0: i32) -> (i32, i32) {
    %c0_i32 = arith.constant 0 : i32
    %c0_i32_0 = arith.constant 0 : i32
    %c0_i32_1 = arith.constant 0 : i32
    return %c0_i32, %c0_i32_0 : i32, i32
  }
  func.func @transform_12(%arg0: i32) -> (i32, i32) {
    %c0_i32 = arith.constant 0 : i32
    %c0_i32_0 = arith.constant 0 : i32
    %c0_i32_1 = arith.constant 0 : i32
    return %c0_i32, %c0_i32_0 : i32, i32
  }
  func.func @transform_13(%arg0: i32) -> (i32, i32) {
    %c0_i32 = arith.constant 0 : i32
    %c0_i32_0 = arith.constant 0 : i32
    %c0_i32_1 = arith.constant 0 : i32
    return %c0_i32, %c0_i32_0 : i32, i32
  }
  func.func @transform_14(%arg0: i32) -> (i32, i32) {
    %c0_i32 = arith.constant 0 : i32
    %c0_i32_0 = arith.constant 0 : i32
    return %arg0, %c0_i32 : i32, i32
  }
}

</mosaic_0001>

<bundles_post_ra>
// kernel: tpu_custom_call.1
= control target key start
LH: loop header
LB: loop body
LE: loop exit
PB: predicated region body
PF: predicated region fallthrough
CT: control target
= control target key end

     0   :  { %19 = vsyncpa [#allocation3], 0  ;;  %s2092_s0 = inlined_call_operand.hbm [shape: f32[16,32], index: 0, kind: input, shape index: {}]   ;;  %s2093_s1 = inlined_call_operand.hbm [shape: f32[2,8,8,16], index: 1, kind: input, shape index: {}]   ;;  %s2094_s2 = inlined_call_operand.hbm [shape: f32[2,8,8], index: 2, kind: input, shape index: {}]   ;;  %s2095_s3 = inlined_call_operand.hbm [shape: f32[16,64], index: 3, kind: input, shape index: {}]   ;;  %s2096_s4 = inlined_call_operand.hbm [shape: f32[32,160], index: 4, kind: input, shape index: {}]   ;;  %s2097_s5 = inlined_call_operand.hbm [shape: f32[32,96], index: 5, kind: input, shape index: {}]   ;;  %s2098_s6 = inlined_call_operand.vmem [shape: f32[1,32], index: 6, kind: input, shape index: {}]   ;;  %s2099_s7 = inlined_call_operand.vmem [shape: f32[1,96], index: 7, kind: input, shape index: {}]   ;;  %s2100_s8 = inlined_call_operand.vmem [shape: f32[1,96], index: 8, kind: input, shape index: {}]   ;;  %s2101_s9 = inlined_call_operand.hbm [shape: f32[32,160], index: 9, kind: input, shape index: {}]   ;;  %s2102_s10 = inlined_call_operand.hbm [shape: f32[32,96], index: 10, kind: input, shape index: {}]   ;;  %s2103_s11 = inlined_call_operand.vmem [shape: f32[1,32], index: 11, kind: input, shape index: {}]   ;;  %s2104_s12 = inlined_call_operand.vmem [shape: f32[1,96], index: 12, kind: input, shape index: {}]   ;;  %s2105_s13 = inlined_call_operand.vmem [shape: f32[1,96], index: 13, kind: input, shape index: {}]   ;;  %s2106_s14 = inlined_call_operand.hbm [shape: f32[16,32], index: 14, kind: output, shape index: {}]  }
   0x1   :  { %20 = vsyncpa [#allocation6], 0 }
   0x2   :  { %21 = vsyncpa [#allocation9], 0 }
   0x3   :  { %22 = vsyncpa [#allocation12], 0 }
   0x4   :  { %23 = vsyncpa [#allocation15], 0 }
   0x5   :  { %24 = vsyncpa [#allocation4], 0  ;;  %s1764_s29 = smov [#allocation5]   ;;  %s1765_s15 = smov [#allocation8]  }
   0x6   :  { %s42_s30 = sshll.u32 %s1764_s29, 4  ;;  %s66_s16 = sshll.u32 %s1765_s15, 4  ;;  %s43_s30 = int_to_ptr.vmem [resolvable:$true] %s42_s30  ;;  %s67_s16 = int_to_ptr.vmem [resolvable:$true] %s66_s16 }
   0x7   :  { %s1580_s17 = scalar_lea.vmem %s43_s30, 2048  ;;  %p1585_p1 = scmp.lt.s32.totalorder %s43_s30, %s43_s30 }
   0x8   :  { %p1581_p0 = scmp.ne.s32.totalorder %s43_s30, %s1580_s17  ;;  %p1586_p2 = scmp.lt.s32.totalorder %s1580_s17, %s1580_s17 }
   0xa   :  { %p1587_p3 = por %p1586_p2, %p1585_p1 }
   0xc   :  { %p1588_p4 = pnand %p1587_p3, %p1581_p0 }
   0xe   :  { %1591 = shalt.err (!%p1588_p4)
}
   0xf   :  { %s1766_s18 = smov 128   ;;  %s1767_s19 = smov 8  }
  0x10   :  { %48 = dma.hbm_to_vmem [thread:$0]  %s2093_s1, 2048, %s43_s30, [#allocation6], %s1766_s18, %s1766_s18, %s1767_s19  }
  0x11   :  { %s1600_s22 = scalar_lea.vmem %s67_s16, 256  ;;  %p1605_p6 = scmp.lt.s32.totalorder %s67_s16, %s67_s16 }
  0x12   :  { %p1601_p5 = scmp.ne.s32.totalorder %s67_s16, %s1600_s22  ;;  %p1606_p7 = scmp.lt.s32.totalorder %s1600_s22, %s1600_s22 }
  0x14   :  { %p1607_p8 = por %p1606_p7, %p1605_p6 }
  0x16   :  { %p1608_p9 = pnand %p1607_p8, %p1601_p5 }
  0x18   :  { %1611 = shalt.err (!%p1608_p9)
}
  0x19   :  { %72 = dma.hbm_to_vmem [thread:$0]  %s2095_s3, 256, %s67_s16, [#allocation9], %s1766_s18, %s1766_s18, %s1767_s19  }
  0x1a   :  { %s1768_s25 = smov [#allocation11]   ;;  %s1769_s27 = smov [#allocation2]  }
  0x1b   :  { %s90_s26 = sshll.u32 %s1768_s25, 4  ;;  %s30_s28 = sshll.u32 %s1769_s27, 4  ;;  %s91_s26 = int_to_ptr.vmem [resolvable:$true] %s90_s26  ;;  %s31_s28 = int_to_ptr.vmem [resolvable:$true] %s30_s28 }
  0x1c   :  { %s1620_s1 = scalar_lea.vmem %s91_s26, 512  ;;  %p1625_p11 = scmp.lt.s32.totalorder %s91_s26, %s91_s26 }
  0x1d   :  { %p1621_p10 = scmp.ne.s32.totalorder %s91_s26, %s1620_s1  ;;  %p1626_p12 = scmp.lt.s32.totalorder %s1620_s1, %s1620_s1 }
  0x1f   :  { %p1627_p13 = por %p1626_p12, %p1625_p11 }
  0x21   :  { %p1628_p0 = pnand %p1627_p13, %p1621_p10 }
  0x23   :  { %1631 = shalt.err (!%p1628_p0)
}
  0x24   :  { %96 = dma.hbm_to_vmem [thread:$0]  %s2097_s5, 512, %s91_s26, [#allocation12], %s1766_s18, %s1766_s18, %s1767_s19  }
  0x25   :  { %s1640_s3 = scalar_lea.vmem %s31_s28, 256  ;;  %p1645_p2 = scmp.lt.s32.totalorder %s31_s28, %s31_s28 }
  0x26   :  { %p1641_p1 = scmp.ne.s32.totalorder %s31_s28, %s1640_s3  ;;  %p1646_p3 = scmp.lt.s32.totalorder %s1640_s3, %s1640_s3 }
  0x28   :  { %p1647_p4 = por %p1646_p3, %p1645_p2 }
  0x2a   :  { %p1648_p5 = pnand %p1647_p4, %p1641_p1 }
  0x2c   :  { %1651 = shalt.err (!%p1648_p5)
}
  0x2d   :  { %36 = dma.hbm_to_vmem [thread:$0]  %s2092_s0, 256, %s31_s28, [#allocation3], %s1766_s18, %s1766_s18, %s1767_s19  }
  0x2e   :  { %s1770_s17 = smov [#allocation7]   ;;  %s1771_s21 = smov [#allocation10]  }
  0x2f   :  { %s54_s20 = sshll.u32 %s1770_s17, 4  ;;  %s78_s22 = sshll.u32 %s1771_s21, 4  ;;  %s55_s20 = int_to_ptr.vmem [resolvable:$true] %s54_s20  ;;  %s79_s22 = int_to_ptr.vmem [resolvable:$true] %s78_s22 }
  0x30   :  { %s1660_s5 = scalar_lea.vmem %s55_s20, 256  ;;  %p1665_p7 = scmp.lt.s32.totalorder %s55_s20, %s55_s20 }
  0x31   :  { %p1661_p6 = scmp.ne.s32.totalorder %s55_s20, %s1660_s5  ;;  %p1666_p8 = scmp.lt.s32.totalorder %s1660_s5, %s1660_s5 }
  0x33   :  { %p1667_p9 = por %p1666_p8, %p1665_p7 }
  0x35   :  { %p1668_p10 = pnand %p1667_p9, %p1661_p6 }
  0x37   :  { %1671 = shalt.err (!%p1668_p10)
}
  0x38   :  { %60 = dma.hbm_to_vmem [thread:$0]  %s2094_s2, 256, %s55_s20, [#allocation6], %s1766_s18, %s1766_s18, %s1767_s19  }
  0x39   :  { %s1680_s0 = scalar_lea.vmem %s79_s22, 1024  ;;  %p1685_p12 = scmp.lt.s32.totalorder %s79_s22, %s79_s22 }
  0x3a   :  { %p1681_p11 = scmp.ne.s32.totalorder %s79_s22, %s1680_s0  ;;  %p1686_p13 = scmp.lt.s32.totalorder %s1680_s0, %s1680_s0 }
  0x3c   :  { %p1687_p0 = por %p1686_p13, %p1685_p12 }
  0x3e   :  { %p1688_p1 = pnand %p1687_p0, %p1681_p11 }
  0x40   :  { %1691 = shalt.err (!%p1688_p1)
}
  0x41   :  { %s1772_s25 = smov 256   ;;  %s1773_s26 = smov 16  }
  0x42   :  { %84 = dma.hbm_to_vmem [thread:$0]  %s2096_s4, 1024, %s79_s22, [#allocation9], %s1772_s25, %s1772_s25, %s1773_s26  }
  0x43   :  { %s1774_s1 = smov [#allocation13]   ;;  %s1775_s30 = smov [#allocation14]  }
  0x44   :  { %s108_s29 = sshll.u32 %s1774_s1, 4  ;;  %s120_s3 = sshll.u32 %s1775_s30, 4  ;;  %s109_s29 = int_to_ptr.vmem [resolvable:$true] %s108_s29  ;;  %s121_s3 = int_to_ptr.vmem [resolvable:$true] %s120_s3 }
  0x45   :  { %s1700_s2 = scalar_lea.vmem %s109_s29, 1024  ;;  %p1705_p3 = scmp.lt.s32.totalorder %s109_s29, %s109_s29 }
  0x46   :  { %p1701_p2 = scmp.ne.s32.totalorder %s109_s29, %s1700_s2  ;;  %p1706_p4 = scmp.lt.s32.totalorder %s1700_s2, %s1700_s2 }
  0x48   :  { %p1707_p5 = por %p1706_p4, %p1705_p3 }
  0x4a   :  { %p1708_p6 = pnand %p1707_p5, %p1701_p2 }
  0x4c   :  { %1711 = shalt.err (!%p1708_p6)
}
  0x4d   :  { %114 = dma.hbm_to_vmem [thread:$0]  %s2101_s9, 1024, %s109_s29, [#allocation12], %s1772_s25, %s1772_s25, %s1773_s26  }
  0x4e   :  { %s1720_s17 = scalar_lea.vmem %s121_s3, 512  ;;  %p1725_p8 = scmp.lt.s32.totalorder %s121_s3, %s121_s3 }
  0x4f   :  { %p1721_p7 = scmp.ne.s32.totalorder %s121_s3, %s1720_s17  ;;  %p1726_p9 = scmp.lt.s32.totalorder %s1720_s17, %s1720_s17 }
  0x51   :  { %p1727_p10 = por %p1726_p9, %p1725_p8 }
  0x53   :  { %p1728_p11 = pnand %p1727_p10, %p1721_p7 }
  0x55   :  { %1731 = shalt.err (!%p1728_p11)
}
  0x56   :  { %126 = dma.hbm_to_vmem [thread:$0]  %s2102_s10, 512, %s121_s3, [#allocation15], %s1766_s18, %s1766_s18, %s1767_s19  }
  0x57   :  { %1752 = dma.done.wait [#allocation3], 256  }
  0x58   :  { %1753 = vsyncadd [#allocation3], 4294967040 }
  0x59   :  { %1754 = dma.done.wait [#allocation6], 2304  }
  0x5a   :  { %1755 = vsyncadd [#allocation6], 4294964992 }
  0x5b   :  { %1756 = dma.done.wait [#allocation9], 1280  }
  0x5c   :  { %1757 = vsyncadd [#allocation9], 4294966016 }
  0x5d   :  { %1758 = dma.done.wait [#allocation12], 1536  }
  0x5e   :  { %1759 = vsyncadd [#allocation12], 4294965760 }
  0x5f   :  { %1760 = dma.done.wait [#allocation15], 512  }
  0x60   :  { %1761 = vsyncadd [#allocation15], 4294966784  ;;  %v184_v0 = vlaneseq  ;;  %v1776_v1 = vmov 0.0   ;;  %v550_v5 = vld [vmem:[#allocation10 + $0x38] sm:$0xff]  ;;  %v549_v6 = vld [vmem:[#allocation10 + $0x30] sm:$0xff]  ;;  %vm558_vm0 = vcmask 261120  }
  0x61   :  { %629 = vmatprep.mubr.f32.mxu1 %v1776_v1  ;;  %v548_v7 = vld [vmem:[#allocation10 + $0x28] sm:$0xff]  ;;  %589 = vmatprep.subr.mxu1 %v550_v5  ;;  %v1905_v9 = vld [vmem:[#allocation7] sm:$0xff]  ;;  %v546_v12 = vld [vmem:[#allocation10 + $0x18] sm:$0xff]  ;;  %vm177_vm1 = vcmask 64512   ;;  %s1777_s21 = smov 32   ;;  %vm312_vm2 = vcmask 130048  }
  0x62   :  { %v1900_v2 = vshrl.u32 %v184_v0, 7  ;;  %v547_v10 = vld [vmem:[#allocation10 + $0x20] sm:$0xff]  ;;  %590 = vmatpush1.msra.mxu1 %v549_v6  ;;  %v545_v14 = vld [vmem:[#allocation10 + $0x10] sm:$0xff]  ;;  %v1909_v15 = vld [vmem:[#allocation7 + $0x8] sm:$0xff]  ;;  %v178_v41 = vsel %vm177_vm1, %v1905_v9, 0.0  ;;  %vm443_vm3 = vcmask 1041409  }
  0x63   :  { %591 = vmatprep.subr.mxu1 %v548_v7  ;;  %v544_v16 = vld [vmem:[#allocation10 + $0x8] sm:$0xff]  ;;  %v543_v18 = vld [vmem:[#allocation10] sm:$0xff]  ;;  %v1914_v21 = vld [vmem:[#allocation2] sm:$0xff]  ;;  %v181_v42 = vsel %vm177_vm1, %v1909_v15, 0.0  ;;  %vm445_vm4 = vcmask 1042434   ;;  %vm447_vm5 = vcmask 1043459  }
  0x64   :  { %v186_v3 = vsub.s32 0, %v1900_v2  ;;  %v200_v4 = vsub.s32 2, %v1900_v2  ;;  %v193_v8 = vsub.s32 1, %v1900_v2  ;;  %592 = vmatpush1.msra.mxu1 %v547_v10  ;;  %v207_v20 = vsub.s32 3, %v1900_v2  ;;  %v1922_v25 = vld [vmem:[#allocation2 + $0x8] sm:$0xff]  ;;  %v425_v40 = vld [vmem:[#allocation8] sm:$0xff] }
  0x65   :  { %593 = vmatprep.subr.mxu1 %v546_v12  ;;  %v214_v24 = vsub.s32 4, %v1900_v2  ;;  %v221_v28 = vsub.s32 5, %v1900_v2  ;;  %v228_v31 = vsub.s32 6, %v1900_v2  ;;  %v235_v34 = vsub.s32 7, %v1900_v2  ;;  %v426_v39 = vld [vmem:[#allocation8 + $0x8] sm:$0xff]  ;;  %v161_v44 = vld [vmem:[#allocation5] sm:$0xff] }
  0x66   :  { %v187_v11 = vrot.slane %v1905_v9, %v186_v3  ;;  %v201_v13 = vrot.slane %v1905_v9, %v200_v4  ;;  %v194_v17 = vrot.slane %v1905_v9, %v193_v8  ;;  %v243_v19 = vrot.slane %v1909_v15, %v186_v3  ;;  %594 = vmatpush1.msra.mxu1 %v545_v14  ;;  %v1438_v43 = vld [vmem:[%s2098_s6] ss:$0 sm:$0xff]  ;;  %v162_v50 = vld [vmem:[#allocation5 + $0x8] sm:$0xff]  ;;  %v169_v52 = vld [vmem:[#allocation5 + $0x40] sm:$0xff]  ;;  %s1779_s6 = smov 96   ;;  %s1780_s23 = smov 64  }
  0x67   :  { %595 = vmatprep.subr.mxu1 %v544_v16  ;;  %v250_v22 = vrot.slane %v1909_v15, %v193_v8  ;;  %v208_v23 = vrot.slane %v1905_v9, %v207_v20  ;;  %v257_v26 = vrot.slane %v1909_v15, %v200_v4  ;;  %v215_v27 = vrot.slane %v1905_v9, %v214_v24  ;;  %v163_v45 = vld [vmem:[#allocation5 + $0x10] sm:$0xff]  ;;  %v170_v61 = vld [vmem:[#allocation5 + $0x48] sm:$0xff]  ;;  %v164_v0 = vld [vmem:[#allocation5 + $0x18] sm:$0xff] }
  0x68   :  { %189 = vbcast.lane.b32.xlu0 %v187_v11, 256  ;;  %203 = vbcast.lane.b32.xlu1 %v201_v13, 256  ;;  %v264_v29 = vrot.slane %v1909_v15, %v207_v20  ;;  %v222_v30 = vrot.slane %v1905_v9, %v221_v28  ;;  %v271_v32 = vrot.slane %v1909_v15, %v214_v24  ;;  %v171_v14 = vld [vmem:[#allocation5 + $0x50] sm:$0xff]  ;;  %vm449_vm6 = vcmask 1044484  }
  0x69   :  { %596 = vmatpush1.msra.mxu1 %v543_v18  ;;  %v229_v33 = vrot.slane %v1905_v9, %v228_v31  ;;  %v278_v35 = vrot.slane %v1909_v15, %v221_v28  ;;  %v236_v36 = vrot.slane %v1905_v9, %v235_v34  ;;  %v285_v37 = vrot.slane %v1909_v15, %v228_v31 }
  0x6a   :  { %1435 = vmatmul.mubr.msk.f32.vlgmr.msra.gmra.mxu1 %vm558_vm0, %v1914_v21  ;;  %v292_v38 = vrot.slane %v1909_v15, %v235_v34  ;;  %1481 = vmatprep.subr.mxu0 %v426_v39  ;;  %vm451_vm7 = vcmask 1045509   ;;  %vm453_vm8 = vcmask 1046534   ;;  %vm455_vm9 = vcmask 1047559  }
  0x6b   :  { %635 = vmatprep.mubr.f32.mxu1 %v1776_v1  ;;  %1482 = vmatpush3.msra.mxu0 %v426_v39  ;;  %vm1778_vm10 = vmmov 0  }
  0x6c   :  { %196 = vbcast.lane.b32.xlu0 %v194_v17, 256  ;;  %245 = vbcast.lane.b32.xlu1 %v243_v19, 256  ;;  %v165_v19 = vld [vmem:[#allocation5 + $0x20] sm:$0xff] }
  0x6d   :  { %1483 = vmatprep.subr.mxu0 %v425_v40 }
  0x6e   :  { %1436 = vmatmul.mubr.msk.f32.gmra.mxu1 %vm558_vm0, %v1922_v25  ;;  %1484 = vmatpush3.msra.mxu0 %v425_v40 }
  0x6f   :  { %1488 = vmatprep.subr.mxu0 %v1776_v1 }
  0x70   :  { %252 = vbcast.lane.b32.xlu0 %v250_v22, 256  ;;  %210 = vbcast.lane.b32.xlu1 %v208_v23, 256 }
  0x74   :  { %259 = vbcast.lane.b32.xlu0 %v257_v26, 256  ;;  %217 = vbcast.lane.b32.xlu1 %v215_v27, 256 }
  0x78   :  { %266 = vbcast.lane.b32.xlu0 %v264_v29, 256  ;;  %224 = vbcast.lane.b32.xlu1 %v222_v30, 256 }
  0x7c   :  { %273 = vbcast.lane.b32.xlu0 %v271_v32, 256  ;;  %231 = vbcast.lane.b32.xlu1 %v229_v33, 256 }
  0x80   :  { %280 = vbcast.lane.b32.xlu0 %v278_v35, 256  ;;  %238 = vbcast.lane.b32.xlu1 %v236_v36, 256  ;;  %v172_v36 = vld [vmem:[#allocation5 + $0x58] sm:$0xff] }
  0x84   :  { %287 = vbcast.lane.b32.xlu0 %v285_v37, 256  ;;  %294 = vbcast.lane.b32.xlu1 %v292_v38, 256 }
  0xa3   :  { %179 = vadd.xlane.f32.xlu0 %v178_v41  ;;  %v166_v41 = vld [vmem:[#allocation5 + $0x28] sm:$0xff] }
  0xa8   :  { %182 = vadd.xlane.f32.xlu1 %v181_v42 }
  0xb9   :  { %659 = vrot.lane.b32.xlu0 %v1438_v43, %s1777_s21 }
  0xda   :  { %v190_v46 = vpop.permute.xlu0 %189  ;;  %v204_v48 = vpop.permute.xlu1 %203 }
  0xdb   :  { %v296_v47 = vmul.f32 %v190_v46, %v161_v44  ;;  %v298_v49 = vmul.f32 %v204_v48, %v163_v45 }
  0xdd   :  { %v313_v51 = vsel %vm312_vm2, %v296_v47, 0.0  ;;  %v327_v54 = vsel %vm312_vm2, %v298_v49, 0.0 }
  0xde   :  { %v314_v53 = vrot.slane %v313_v51, 4  ;;  %v197_v55 = vpop.permute.xlu0 %196  ;;  %v328_v56 = vrot.slane %v327_v54, 4  ;;  %v246_v58 = vpop.permute.xlu1 %245 }
  0xdf   :  { %v297_v57 = vmul.f32 %v197_v55, %v162_v50  ;;  %v304_v60 = vmul.f32 %v246_v58, %v169_v52 }
  0xe0   :  { %v315_v59 = vadd.f32 %v314_v53, %v313_v51  ;;  %v329_v62 = vadd.f32 %v328_v56, %v327_v54  ;;  %v173_v56 = vld [vmem:[#allocation5 + $0x60] sm:$0xff] }
  0xe1   :  { %v320_v63 = vsel %vm312_vm2, %v297_v57, 0.0  ;;  %v369_v4 = vsel %vm312_vm2, %v304_v60, 0.0 }
  0xe2   :  { %v316_v2 = vrot.slane %v315_v59, 2  ;;  %v321_v3 = vrot.slane %v320_v63, 4  ;;  %v253_v5 = vpop.permute.xlu0 %252  ;;  %v330_v6 = vrot.slane %v329_v62, 2  ;;  %v370_v7 = vrot.slane %v369_v4, 4  ;;  %v211_v10 = vpop.permute.xlu1 %210 }
  0xe3   :  { %v305_v8 = vmul.f32 %v253_v5, %v170_v61  ;;  %v299_v13 = vmul.f32 %v211_v10, %v164_v0 }
  0xe4   :  { %v317_v11 = vadd.f32 %v316_v2, %v315_v59  ;;  %v322_v12 = vadd.f32 %v321_v3, %v320_v63  ;;  %v331_v16 = vadd.f32 %v330_v6, %v329_v62  ;;  %v371_v17 = vadd.f32 %v370_v7, %v369_v4  ;;  %v167_v3 = vld [vmem:[#allocation5 + $0x30] sm:$0xff] }
  0xe5   :  { %v376_v18 = vsel %vm312_vm2, %v305_v8, 0.0  ;;  %v334_v24 = vsel %vm312_vm2, %v299_v13, 0.0 }
  0xe6   :  { %v318_v20 = vrot.slane %v317_v11, 1  ;;  %v323_v22 = vrot.slane %v322_v12, 2  ;;  %v377_v23 = vrot.slane %v376_v18, 4  ;;  %v260_v26 = vpop.permute.xlu0 %259  ;;  %v332_v27 = vrot.slane %v331_v16, 1  ;;  %v218_v31 = vpop.permute.xlu1 %217 }
  0xe7   :  { %v372_v28 = vrot.slane %v371_v17, 2  ;;  %v335_v29 = vrot.slane %v334_v24, 4  ;;  %v306_v30 = vmul.f32 %v260_v26, %v171_v14  ;;  %v300_v35 = vmul.f32 %v218_v31, %v165_v19  ;;  %v174_v14 = vld [vmem:[#allocation5 + $0x68] sm:$0xff] }
  0xe8   :  { %v319_v32 = vadd.f32 %v318_v20, %v317_v11  ;;  %v324_v33 = vadd.f32 %v323_v22, %v322_v12  ;;  %v378_v34 = vadd.f32 %v377_v23, %v376_v18  ;;  %v1954_v37 = vadd.f32 %v332_v27, %v331_v16  ;;  %v168_v27 = vld [vmem:[#allocation5 + $0x38] sm:$0xff] }
  0xe9   :  { %v373_v38 = vadd.f32 %v372_v28, %v371_v17  ;;  %v336_v39 = vadd.f32 %v335_v29, %v334_v24  ;;  %v383_v40 = vsel %vm312_vm2, %v306_v30, 0.0  ;;  %v341_v45 = vsel %vm312_vm2, %v300_v35, 0.0 }
  0xea   :  { %v325_v42 = vrot.slane %v324_v33, 1  ;;  %v379_v43 = vrot.slane %v378_v34, 2  ;;  %v384_v44 = vrot.slane %v383_v40, 4  ;;  %v267_v46 = vpop.permute.xlu0 %266  ;;  %v342_v49 = vrot.slane %v341_v45, 4  ;;  %v225_v51 = vpop.permute.xlu1 %224 }
  0xeb   :  { %v374_v47 = vrot.slane %v373_v38, 1  ;;  %v337_v48 = vrot.slane %v336_v39, 2  ;;  %v307_v50 = vmul.f32 %v267_v46, %v172_v36  ;;  %v301_v55 = vmul.f32 %v225_v51, %v166_v41 }
  0xec   :  { %v326_v52 = vadd.f32 %v325_v42, %v324_v33  ;;  %v380_v53 = vadd.f32 %v379_v43, %v378_v34  ;;  %v385_v54 = vadd.f32 %v384_v44, %v383_v40  ;;  %v343_v59 = vadd.f32 %v342_v49, %v341_v45 }
  0xed   :  { %v375_v57 = vadd.f32 %v374_v47, %v373_v38  ;;  %v338_v58 = vadd.f32 %v337_v48, %v336_v39  ;;  %v390_v60 = vsel %vm312_vm2, %v307_v50, 0.0  ;;  %v348_v6 = vsel %vm312_vm2, %v301_v55, 0.0  ;;  %v175_v38 = vld [vmem:[#allocation5 + $0x70] sm:$0xff]  ;;  %v176_v48 = vld [vmem:[#allocation5 + $0x78] sm:$0xff] }
  0xee   :  { %v1960_v61 = vsel %vm443_vm3, %v326_v52, %v319_v32  ;;  %v381_v62 = vrot.slane %v380_v53, 1  ;;  %v386_v63 = vrot.slane %v385_v54, 2  ;;  %v391_v0 = vrot.slane %v390_v60, 4  ;;  %v274_v2 = vpop.permute.xlu0 %273  ;;  %v232_v8 = vpop.permute.xlu1 %231 }
  0xef   :  { %v339_v4 = vrot.slane %v338_v58, 1  ;;  %v344_v5 = vrot.slane %v343_v59, 2  ;;  %v308_v7 = vmul.f32 %v274_v2, %v173_v56  ;;  %v349_v13 = vrot.slane %v348_v6, 4 }
  0xf0   :  { %v382_v10 = vadd.f32 %v381_v62, %v380_v53  ;;  %v387_v11 = vadd.f32 %v386_v63, %v385_v54  ;;  %v392_v12 = vadd.f32 %v391_v0, %v390_v60  ;;  %v302_v19 = vmul.f32 %v232_v8, %v167_v3 }
  0xf1   :  { %v340_v16 = vadd.f32 %v339_v4, %v338_v58  ;;  %v345_v17 = vadd.f32 %v344_v5, %v343_v59  ;;  %v397_v18 = vsel %vm312_vm2, %v308_v7, 0.0  ;;  %v350_v24 = vadd.f32 %v349_v13, %v348_v6 }
  0xf2   :  { %v457_v20 = vsel %vm443_vm3, %v382_v10, %v375_v57  ;;  %v388_v22 = vrot.slane %v387_v11, 1  ;;  %v393_v23 = vrot.slane %v392_v12, 2  ;;  %v281_v26 = vpop.permute.xlu0 %280  ;;  %v398_v29 = vrot.slane %v397_v18, 4  ;;  %v239_v32 = vpop.permute.xlu1 %238 }
  0xf3   :  { %v346_v28 = vrot.slane %v345_v17, 1  ;;  %v355_v30 = vsel %vm312_vm2, %v302_v19, 0.0  ;;  %v309_v31 = vmul.f32 %v281_v26, %v174_v14  ;;  %v351_v35 = vrot.slane %v350_v24, 2 }
  0xf4   :  { %v389_v33 = vadd.f32 %v388_v22, %v387_v11  ;;  %v394_v34 = vadd.f32 %v393_v23, %v392_v12  ;;  %v356_v36 = vrot.slane %v355_v30, 4  ;;  %v399_v40 = vadd.f32 %v398_v29, %v397_v18 }
  0xf5   :  { %v347_v39 = vadd.f32 %v346_v28, %v345_v17  ;;  %v404_v41 = vsel %vm312_vm2, %v309_v31, 0.0  ;;  %v303_v42 = vmul.f32 %v239_v32, %v168_v27  ;;  %v352_v45 = vadd.f32 %v351_v35, %v350_v24 }
  0xf6   :  { %v458_v43 = vsel %vm445_vm4, %v389_v33, %v457_v20  ;;  %v395_v44 = vrot.slane %v394_v34, 1  ;;  %v357_v46 = vadd.f32 %v356_v36, %v355_v30  ;;  %v288_v47 = vpop.permute.xlu0 %287  ;;  %v400_v49 = vrot.slane %v399_v40, 2  ;;  %v295_v53 = vpop.permute.xlu1 %294 }
  0xf7   :  { %v405_v50 = vrot.slane %v404_v41, 4  ;;  %v362_v51 = vsel %vm312_vm2, %v303_v42, 0.0  ;;  %v310_v52 = vmul.f32 %v288_v47, %v175_v38  ;;  %v353_v55 = vrot.slane %v352_v45, 1 }
  0xf8   :  { %v396_v54 = vadd.f32 %v395_v44, %v394_v34  ;;  %v358_v56 = vrot.slane %v357_v46, 2  ;;  %v363_v57 = vrot.slane %v362_v51, 4  ;;  %v401_v58 = vadd.f32 %v400_v49, %v399_v40 }
  0xf9   :  { %v406_v59 = vadd.f32 %v405_v50, %v404_v41  ;;  %v411_v60 = vsel %vm312_vm2, %v310_v52, 0.0  ;;  %v311_v62 = vmul.f32 %v295_v53, %v176_v48  ;;  %v354_v63 = vadd.f32 %v353_v55, %v352_v45  ;;  %v1437_v52 = vld [vmem:[%s2099_s7] ss:$0 sm:$0xff]  ;;  %v554_v53 = vld [vmem:[#allocation11 + $0x18] sm:$0xff]  ;;  %v552_v55 = vld [vmem:[#allocation11 + $0x8] sm:$0xff] }
  0xfa   :  { %v359_v0 = vadd.f32 %v358_v56, %v357_v46  ;;  %v364_v2 = vadd.f32 %v363_v57, %v362_v51  ;;  %v412_v3 = vrot.slane %v411_v60, 4  ;;  %v402_v4 = vrot.slane %v401_v58, 1  ;;  %1498 = vmatprep.subr.mxu1 %v554_v53  ;;  %v551_v56 = vld [vmem:[#allocation11] sm:$0xff] }
  0xfb   :  { %v407_v5 = vrot.slane %v406_v59, 2  ;;  %v418_v6 = vsel %vm312_vm2, %v311_v62, 0.0  ;;  %v446_v7 = vsel %vm445_vm4, %v1954_v37, %v1960_v61  ;;  %v459_v18 = vsel %vm447_vm5, %v396_v54, %v458_v43  ;;  %1499 = vmatpush3.msra.mxu1 %v554_v53  ;;  %v553_v54 = vld [vmem:[#allocation11 + $0x10] sm:$0xff] }
  0xfc   :  { %v360_v8 = vrot.slane %v359_v0, 1  ;;  %v365_v10 = vrot.slane %v364_v2, 2  ;;  %v413_v11 = vadd.f32 %v412_v3, %v411_v60  ;;  %v419_v12 = vrot.slane %v418_v6, 4  ;;  %1500 = vmatprep.subr.mxu1 %v553_v54 }
  0xfd   :  { %v403_v13 = vadd.f32 %v402_v4, %v401_v58  ;;  %v408_v14 = vadd.f32 %v407_v5, %v406_v59  ;;  %v448_v17 = vsel %vm447_vm5, %v340_v16, %v446_v7  ;;  %1501 = vmatpush3.msra.mxu1 %v553_v54 }
  0xfe   :  { %v366_v19 = vadd.f32 %v365_v10, %v364_v2  ;;  %v414_v20 = vrot.slane %v413_v11, 2  ;;  %v420_v22 = vadd.f32 %v419_v12, %v418_v6  ;;  %v361_v23 = vadd.f32 %v360_v8, %v359_v0  ;;  %1502 = vmatprep.subr.mxu1 %v552_v55 }
  0xff   :  { %v409_v24 = vrot.slane %v408_v14, 1  ;;  %v450_v26 = vsel %vm449_vm6, %v347_v39, %v448_v17  ;;  %v460_v27 = vsel %vm449_vm6, %v403_v13, %v459_v18  ;;  %1503 = vmatpush3.msra.mxu1 %v552_v55 }
 0x100   :  { %v415_v37 = vadd.f32 %v414_v20, %v413_v11  ;;  %v421_v61 = vrot.slane %v420_v22, 2  ;;  %v367_v28 = vrot.slane %v366_v19, 1  ;;  %v452_v29 = vsel %vm451_vm7, %v354_v63, %v450_v26  ;;  %1504 = vmatprep.subr.mxu1 %v551_v56  ;;  %v1441_v11 = vld [vmem:[%s2100_s8] ss:$0 sm:$0xff] }
 0x101   :  { %v410_v30 = vadd.f32 %v409_v24, %v408_v14  ;;  %v454_v31 = vsel %vm453_vm8, %v361_v23, %v452_v29  ;;  %1505 = vmatpush3.msra.mxu1 %v551_v56 }
 0x102   :  { %v416_v16 = vrot.slane %v415_v37, 1  ;;  %v422_v32 = vadd.f32 %v421_v61, %v420_v22  ;;  %v368_v33 = vadd.f32 %v367_v28, %v366_v19  ;;  %1509 = vmatprep.subr.mxu1 %v1776_v1 }
 0x103   :  { %v461_v34 = vsel %vm451_vm7, %v410_v30, %v460_v27 }
 0x104   :  { %v417_v35 = vadd.f32 %v416_v16, %v415_v37  ;;  %v423_v36 = vrot.slane %v422_v32, 1  ;;  %v456_v38 = vsel %vm455_vm9, %v368_v33, %v454_v31 }
 0x105   :  { %1485 = vmatprep.mubr.msk.f32.mxu0 %vm312_vm2, %v456_v38 }
 0x106   :  { %v424_v39 = vadd.f32 %v423_v36, %v422_v32  ;;  %v462_v40 = vsel %vm453_vm8, %v417_v35, %v461_v34 }
 0x108   :  { %v463_v41 = vsel %vm455_vm9, %v424_v39, %v462_v40 }
 0x109   :  { %1486 = vmatmul.mubr.msk.f32.vlgmr.msra.gmra.mxu0 %vm312_vm2, %v463_v41  ;;  %v976_v41 = vld [vmem:[#allocation13 + $0x38] sm:$0xff] }
 0x10a   :  { %1490 = vmatprep.mubr.msk.f32.mxu0 %vm1778_vm10, %v1776_v1 }
 0x12a   :  { %v1988_v43 = vpop.f32.mrf.mxu1 }
 0x12b   :  { %1489 = vmatpush3.msra.mxu0 %v1988_v43 }
 0x12c   :  { %v1986_v42 = vpop.xlane.xlu0 %179  ;;  %v1991_v44 = vpop.f32.mrf.mxu1  ;;  %1491 = vmatmul.mubr.msk.f32.vlgmr.msra.gmra.mxu0 %vm177_vm1, %v1905_v9  ;;  %1493 = vmatprep.subr.mxu0 %v1776_v1 }
 0x12d   :  { %1495 = vmatprep.mubr.msk.f32.mxu0 %vm1778_vm10, %v1776_v1 }
 0x12e   :  { %v637_v47 = vpop.f32.mrf.mxu1 }
 0x12f   :  { %1494 = vmatpush3.msra.mxu0 %v637_v47 }
 0x130   :  { %v660_v45 = vpop.permute.xlu0 %659  ;;  %1496 = vmatmul.mubr.msk.f32.vlgmr.msra.gmra.mxu0 %vm177_vm1, %v1909_v15  ;;  %v639_v10 = vpop.f32.mrf.mxu1  ;;  %1018 = vmatprep.subr.mxu0 %v976_v41 }
 0x131   :  { %v662_v46 = vadd.f32 %v660_v45, %v1988_v43  ;;  %v663_v48 = vadd.f32 %v660_v45, %v637_v47  ;;  %v1999_v49 = vpop.xlane.xlu1 %182  ;;  %1058 = vmatprep.mubr.f32.mxu0 %v1776_v1  ;;  %v974_v45 = vld [vmem:[#allocation13 + $0x28] sm:$0xff] }
 0x133   :  { %v664_v50 = vmul.f32 %v662_v46, %v1986_v42  ;;  %v665_v51 = vmul.f32 %v663_v48, %v1999_v49  ;;  %v973_v46 = vld [vmem:[#allocation13 + $0x20] sm:$0xff]  ;;  %v971_v48 = vld [vmem:[#allocation13 + $0x10] sm:$0xff] }
 0x135   :  { %667 = vrot.lane.b32.xlu1 %v664_v50, %s1779_s6  ;;  %744 = vrot.lane.b32.xlu0 %v665_v51, %s1779_s6  ;;  %v970_v51 = vld [vmem:[#allocation13 + $0x8] sm:$0xff] }
 0x139   :  { %647 = vrot.lane.b32.xlu1 %v1437_v52, %s1780_s23 }
 0x1a7   :  { %v668_v59 = vpop.permute.xlu1 %667  ;;  %v745_v2 = vpop.permute.xlu0 %744 }
 0x1ab   :  { %v648_v18 = vpop.permute.xlu1 %647 }
 0x1ac   :  { %v652_v19 = vadd.f32 %v648_v18, %v637_v47  ;;  %v650_v23 = vadd.f32 %v648_v18, %v1988_v43  ;;  %v651_v34 = vadd.f32 %v648_v18, %v1991_v44  ;;  %v653_v38 = vadd.f32 %v648_v18, %v639_v10  ;;  %v975_v43 = vld [vmem:[#allocation13 + $0x30] sm:$0xff]  ;;  %v972_v47 = vld [vmem:[#allocation13 + $0x18] sm:$0xff]  ;;  %v969_v44 = vld [vmem:[#allocation13] sm:$0xff] }
 0x1ad   :  { %1019 = vmatpush1.msra.mxu0 %v975_v43 }
 0x1ae   :  { %1020 = vmatprep.subr.mxu0 %v974_v45 }
 0x1af   :  { %1021 = vmatpush1.msra.mxu0 %v973_v46 }
 0x1b0   :  { %1022 = vmatprep.subr.mxu0 %v972_v47 }
 0x1b1   :  { %1023 = vmatpush1.msra.mxu0 %v971_v48 }
 0x1b2   :  { %1024 = vmatprep.subr.mxu0 %v970_v51 }
 0x1b3   :  { %1025 = vmatpush1.msra.mxu0 %v969_v44 }
 0x1c9   :  { %v2013_v57 = vpop.f32.mrf.mxu0 }
 0x1cb   :  { %v2015_v58 = vpop.f32.mrf.mxu0 }
 0x1ec   :  { %v739_v60 = vpop.f32.mrf.mxu0 }
 0x1ed   :  { %v740_v62 = vadd.f32 %v739_v60, %v668_v59 }
 0x1ee   :  { %v1492_v63 = vpop.f32.mrf.mxu0 }
 0x1ef   :  { %v820_v0 = vadd.f32 %v740_v62, %v2015_v58 }
 0x1f0   :  { %v816_v3 = vpop.f32.mrf.mxu0 }
 0x1f1   :  { %v822_v4 = vmul.f32 0.125, %v820_v0  ;;  %v817_v5 = vadd.f32 %v816_v3, %v745_v2 }
 0x1f2   :  { %v1497_v6 = vpop.f32.mrf.mxu0 }
 0x1f3   :  { %v821_v7 = vadd.f32 %v2013_v57, %v817_v5  ;;  %1506 = vmatprep.mubr.msk.f32.mxu1 %vm558_vm0, %v822_v4 }
 0x1f5   :  { %v823_v8 = vmul.f32 0.125, %v821_v7 }
 0x1f7   :  { %1507 = vmatmul.mubr.msk.f32.vlgmr.msra.gmra.mxu1 %vm558_vm0, %v823_v8 }
 0x1f8   :  { %1511 = vmatprep.mubr.msk.f32.mxu1 %vm1778_vm10, %v1776_v1 }
 0x2b7   :  { %v1508_v12 = vpop.f32.mrf.mxu1 }
 0x2b8   :  { %v908_v13 = vadd.f32 %v1508_v12, %v1441_v11 }
 0x2b9   :  { %v902_v14 = vpop.f32.mrf.mxu1 }
 0x2ba   :  { %v903_v17 = vadd.f32 %v1441_v11, %v902_v14  ;;  %915 = vrot.lane.b32.xlu1 %v908_v13, %s1780_s23 }
 0x2bc   :  { %913 = vrot.lane.b32.xlu0 %v903_v17, %s1780_s23 }
 0x32c   :  { %v916_v20 = vpop.permute.xlu1 %915 }
 0x32d   :  { %v920_v22 = vadd.f32 %v916_v20, %v652_v19 }
 0x32e   :  { %v914_v24 = vpop.permute.xlu0 %913 }
 0x32f   :  { %v1445_v26 = vmul.f32 -1.442695, %v920_v22  ;;  %v919_v27 = vadd.f32 %v914_v24, %v650_v23 }
 0x331   :  { %1548 = vpow2.f32 %v1445_v26  ;;  %v1444_v37 = vmul.f32 -1.442695, %v919_v27 }
 0x333   :  { %1550 = vpow2.f32 %v1444_v37 }
 0x33e   :  { %v1549_v61 = vpop.eup %1548 }
 0x33f   :  { %v928_v28 = vadd.f32 1.0, %v1549_v61 }
 0x340   :  { %v1551_v29 = vpop.eup %1550 }
 0x341   :  { %1552 = vrcp.f32 %v928_v28  ;;  %v927_v30 = vadd.f32 1.0, %v1551_v29 }
 0x343   :  { %1554 = vrcp.f32 %v927_v30 }
 0x34e   :  { %v1553_v31 = vpop.eup %1552 }
 0x34f   :  { %v934_v16 = vmul.f32 %v1553_v31, %v908_v13  ;;  %v948_v63 = vsub.f32 1.0, %v1553_v31 }
 0x350   :  { %v1555_v32 = vpop.eup %1554 }
 0x351   :  { %939 = vrot.lane.b32.xlu1 %v934_v16, %s1780_s23  ;;  %v933_v33 = vmul.f32 %v1555_v32, %v903_v17  ;;  %v947_v54 = vsub.f32 1.0, %v1555_v32  ;;  %v1452_v16 = vld [vmem:[%s2105_s13] ss:$0 sm:$0xff]  ;;  %s1781_s13 = smov [#allocation16]  }
 0x352   :  { %s1417_s27 = sshll.u32 %s1781_s13, 4  ;;  %s1418_s27 = int_to_ptr.vmem [resolvable:$true] %s1417_s27 }
 0x353   :  { %937 = vrot.lane.b32.xlu0 %v933_v33, %s1780_s23  ;;  %s1732_s28 = scalar_lea.vmem %s1418_s27, 256  ;;  %p1737_p13 = scmp.lt.s32.totalorder %s1418_s27, %s1418_s27 }
 0x354   :  { %p1733_p12 = scmp.ne.s32.totalorder %s1418_s27, %s1732_s28  ;;  %p1738_p0 = scmp.lt.s32.totalorder %s1732_s28, %s1732_s28 }
 0x355   :  { %959 = vrot.lane.b32.xlu1 %v822_v4, %s1779_s6  ;;  %v1449_v4 = vld [vmem:[%s2103_s11] ss:$0 sm:$0xff] }
 0x356   :  { %p1739_p1 = por %p1738_p0, %p1737_p13 }
 0x358   :  { %p1740_p2 = pnand %p1739_p1, %p1733_p12 }
 0x359   :  { %961 = vrot.lane.b32.xlu1 %v823_v8, %s1779_s6 }
 0x3c3   :  { %v940_v35 = vpop.permute.xlu1 %939 }
 0x3c4   :  { %v944_v40 = vadd.f32 %v940_v35, %v653_v38 }
 0x3c5   :  { %v938_v36 = vpop.permute.xlu0 %937 }
 0x3c6   :  { %v943_v39 = vadd.f32 %v938_v36, %v651_v34 }
 0x3c7   :  { %v960_v53 = vpop.permute.xlu1 %959 }
 0x3c8   :  { %1556 = vtanh.f32 %v943_v39  ;;  %v965_v56 = vmul.f32 %v1555_v32, %v960_v53 }
 0x3c9   :  { %1558 = vtanh.f32 %v944_v40 }
 0x3cb   :  { %v962_v60 = vpop.permute.xlu1 %961 }
 0x3cc   :  { %v966_v2 = vmul.f32 %v1553_v31, %v962_v60 }
 0x3d5   :  { %v1557_v50 = vpop.eup %1556 }
 0x3d6   :  { %951 = vrot.lane.b32.xlu0 %v1557_v50, %s1779_s6  ;;  %v1559_v52 = vpop.eup %1558 }
 0x3da   :  { %953 = vrot.lane.b32.xlu0 %v1559_v52, %s1779_s6 }
 0x448   :  { %v952_v55 = vpop.permute.xlu0 %951 }
 0x449   :  { %v957_v59 = vmul.f32 %v952_v55, %v947_v54 }
 0x44b   :  { %v967_v62 = vadd.f32 %v965_v56, %v957_v59 }
 0x44c   :  { %v954_v0 = vpop.permute.xlu0 %953 }
 0x44d   :  { %v958_v3 = vmul.f32 %v954_v0, %v948_v63  ;;  %986 = vrot.lane.b32.xlu0 %v967_v62, %s1777_s21 }
 0x44f   :  { %v968_v5 = vadd.f32 %v966_v2, %v958_v3 }
 0x451   :  { %988 = vrot.lane.b32.xlu1 %v968_v5, %s1777_s21  ;;  %1088 = vrot.lane.b32.xlu0 %v1449_v4, %s1777_s21 }
 0x4bf   :  { %v987_v6 = vpop.permute.xlu0 %986 }
 0x4c0   :  { %1446 = vmatmul.mubr.msk.f32.vlgmr.msra.gmra.mxu0 %vm558_vm0, %v987_v6 }
 0x4c1   :  { %1064 = vmatprep.mubr.f32.mxu0 %v1776_v1 }
 0x4c3   :  { %v989_v7 = vpop.permute.xlu1 %988  ;;  %v1089_v8 = vpop.permute.xlu0 %1088 }
 0x4c4   :  { %1447 = vmatmul.mubr.msk.f32.gmra.mxu0 %vm558_vm0, %v989_v7 }
 0x580   :  { %v1060_v10 = vpop.f32.mrf.mxu0 }
 0x581   :  { %v1091_v11 = vadd.f32 %v1089_v8, %v1060_v10  ;;  %1510 = vmatpush3.msra.mxu1 %v1060_v10 }
 0x582   :  { %v2045_v12 = vpop.f32.mrf.mxu0  ;;  %1512 = vmatmul.mubr.msk.f32.vlgmr.msra.gmra.mxu1 %vm177_vm1, %v1905_v9  ;;  %1514 = vmatprep.subr.mxu1 %v1776_v1  ;;  %v1448_v9 = vld [vmem:[%s2104_s12] ss:$0 sm:$0xff] }
 0x583   :  { %v1093_v13 = vmul.f32 %v1091_v11, %v1986_v42  ;;  %1516 = vmatprep.mubr.msk.f32.mxu1 %vm1778_vm10, %v1776_v1  ;;  %v980_v1 = vld [vmem:[#allocation14 + $0x18] sm:$0xff]  ;;  %v978_v42 = vld [vmem:[#allocation14 + $0x8] sm:$0xff] }
 0x584   :  { %v1066_v14 = vpop.f32.mrf.mxu0  ;;  %1519 = vmatprep.subr.mxu0 %v980_v1 }
 0x585   :  { %v1092_v17 = vadd.f32 %v1089_v8, %v1066_v14  ;;  %1515 = vmatpush3.msra.mxu1 %v1066_v14  ;;  %1096 = vrot.lane.b32.xlu1 %v1093_v13, %s1779_s6 }
 0x586   :  { %1517 = vmatmul.mubr.msk.f32.vlgmr.msra.gmra.mxu1 %vm177_vm1, %v1909_v15  ;;  %1520 = vmatpush3.msra.mxu0 %v980_v1  ;;  %v979_v15 = vld [vmem:[#allocation14 + $0x10] sm:$0xff]  ;;  %v1068_v31 = vpop.f32.mrf.mxu0 }
 0x587   :  { %v1094_v18 = vmul.f32 %v1092_v17, %v1999_v49  ;;  %1521 = vmatprep.subr.mxu0 %v979_v15  ;;  %v977_v49 = vld [vmem:[#allocation14] sm:$0xff] }
 0x588   :  { %1522 = vmatpush3.msra.mxu0 %v979_v15 }
 0x589   :  { %1170 = vrot.lane.b32.xlu0 %v1094_v18, %s1779_s6  ;;  %1245 = vrot.lane.b32.xlu1 %v2015_v58, %s1779_s6 }
 0x58a   :  { %1523 = vmatprep.subr.mxu0 %v978_v42 }
 0x58b   :  { %1524 = vmatpush3.msra.mxu0 %v978_v42 }
 0x58c   :  { %1525 = vmatprep.subr.mxu0 %v977_v49 }
 0x58d   :  { %1247 = vrot.lane.b32.xlu0 %v2013_v57, %s1779_s6  ;;  %1076 = vrot.lane.b32.xlu1 %v1448_v9, %s1780_s23 }
 0x58e   :  { %1526 = vmatpush3.msra.mxu0 %v977_v49 }
 0x5f7   :  { %v1097_v58 = vpop.permute.xlu1 %1096 }
 0x5fb   :  { %v1171_v19 = vpop.permute.xlu0 %1170  ;;  %v1246_v23 = vpop.permute.xlu1 %1245 }
 0x5ff   :  { %v1248_v61 = vpop.permute.xlu0 %1247  ;;  %v1077_v36 = vpop.permute.xlu1 %1076 }
 0x600   :  { %v1081_v38 = vadd.f32 %v1077_v36, %v1066_v14  ;;  %v1079_v41 = vadd.f32 %v1077_v36, %v1060_v10  ;;  %v1082_v56 = vadd.f32 %v1077_v36, %v1068_v31  ;;  %v1080_v62 = vadd.f32 %v1077_v36, %v2045_v12 }
 0x642   :  { %v1165_v20 = vpop.f32.mrf.mxu1 }
 0x643   :  { %v1166_v22 = vadd.f32 %v1165_v20, %v1097_v58 }
 0x644   :  { %v1513_v57 = vpop.f32.mrf.mxu1 }
 0x645   :  { %v1251_v24 = vadd.f32 %v1246_v23, %v1166_v22 }
 0x646   :  { %v1239_v26 = vpop.f32.mrf.mxu1 }
 0x647   :  { %v1253_v27 = vmul.f32 0.125, %v1251_v24  ;;  %v1240_v37 = vadd.f32 %v1239_v26, %v1171_v19 }
 0x648   :  { %v1518_v28 = vpop.f32.mrf.mxu1 }
 0x649   :  { %v1252_v29 = vadd.f32 %v1248_v61, %v1240_v37  ;;  %1527 = vmatprep.mubr.msk.f32.mxu0 %vm558_vm0, %v1253_v27 }
 0x64b   :  { %v1254_v30 = vmul.f32 0.125, %v1252_v29 }
 0x64d   :  { %1528 = vmatmul.mubr.msk.f32.vlgmr.msra.gmra.mxu0 %vm558_vm0, %v1254_v30 }
 0x70d   :  { %v1529_v32 = vpop.f32.mrf.mxu0 }
 0x70e   :  { %v1339_v33 = vadd.f32 %v1529_v32, %v1452_v16 }
 0x70f   :  { %v1333_v34 = vpop.f32.mrf.mxu0 }
 0x710   :  { %v1334_v35 = vadd.f32 %v1452_v16, %v1333_v34  ;;  %1346 = vrot.lane.b32.xlu1 %v1339_v33, %s1780_s23 }
 0x712   :  { %1344 = vrot.lane.b32.xlu0 %v1334_v35, %s1780_s23 }
 0x782   :  { %v1347_v39 = vpop.permute.xlu1 %1346 }
 0x783   :  { %v1351_v40 = vadd.f32 %v1347_v39, %v1081_v38 }
 0x784   :  { %v1345_v43 = vpop.permute.xlu0 %1344 }
 0x785   :  { %v1456_v45 = vmul.f32 -1.442695, %v1351_v40  ;;  %v1350_v46 = vadd.f32 %v1345_v43, %v1079_v41 }
 0x787   :  { %1560 = vpow2.f32 %v1456_v45  ;;  %v1455_v47 = vmul.f32 -1.442695, %v1350_v46 }
 0x789   :  { %1562 = vpow2.f32 %v1455_v47 }
 0x794   :  { %v1561_v48 = vpop.eup %1560 }
 0x795   :  { %v1359_v50 = vadd.f32 1.0, %v1561_v48 }
 0x796   :  { %v1563_v51 = vpop.eup %1562 }
 0x797   :  { %1564 = vrcp.f32 %v1359_v50  ;;  %v1358_v44 = vadd.f32 1.0, %v1563_v51 }
 0x799   :  { %1566 = vrcp.f32 %v1358_v44 }
 0x7a4   :  { %v1565_v52 = vpop.eup %1564 }
 0x7a5   :  { %v1365_v53 = vmul.f32 %v1565_v52, %v1339_v33  ;;  %v1379_v6 = vsub.f32 1.0, %v1565_v52 }
 0x7a6   :  { %v1567_v54 = vpop.eup %1566 }
 0x7a7   :  { %1370 = vrot.lane.b32.xlu1 %v1365_v53, %s1780_s23  ;;  %v1364_v55 = vmul.f32 %v1567_v54, %v1334_v35  ;;  %v1378_v10 = vsub.f32 1.0, %v1567_v54 }
 0x7a9   :  { %1368 = vrot.lane.b32.xlu0 %v1364_v55, %s1780_s23 }
 0x819   :  { %v1371_v59 = vpop.permute.xlu1 %1370 }
 0x81a   :  { %v1375_v60 = vadd.f32 %v1371_v59, %v1082_v56 }
 0x81b   :  { %v1369_v63 = vpop.permute.xlu0 %1368 }
 0x81c   :  { %1568 = vtanh.f32 %v1375_v60  ;;  %v1374_v0 = vadd.f32 %v1369_v63, %v1080_v62 }
 0x81e   :  { %1570 = vtanh.f32 %v1374_v0 }
 0x829   :  { %v1569_v2 = vpop.eup %1568 }
 0x82a   :  { %1384 = vrot.lane.b32.xlu1 %v1569_v2, %s1779_s6 }
 0x82b   :  { %v1571_v3 = vpop.eup %1570 }
 0x82c   :  { %1382 = vrot.lane.b32.xlu0 %v1571_v3, %s1779_s6 }
 0x82e   :  { %1392 = vrot.lane.b32.xlu1 %v1254_v30, %s1779_s6 }
 0x830   :  { %1390 = vrot.lane.b32.xlu0 %v1253_v27, %s1779_s6 }
 0x89c   :  { %v1385_v4 = vpop.permute.xlu1 %1384 }
 0x89d   :  { %v1389_v8 = vmul.f32 %v1385_v4, %v1379_v6 }
 0x89e   :  { %v1383_v5 = vpop.permute.xlu0 %1382 }
 0x89f   :  { %v1388_v13 = vmul.f32 %v1383_v5, %v1378_v10 }
 0x8a0   :  { %v1393_v7 = vpop.permute.xlu1 %1392 }
 0x8a1   :  { %v1397_v11 = vmul.f32 %v1565_v52, %v1393_v7 }
 0x8a2   :  { %v1391_v12 = vpop.permute.xlu0 %1390 }
 0x8a3   :  { %v1399_v14 = vadd.f32 %v1397_v11, %v1389_v8  ;;  %v1396_v17 = vmul.f32 %v1567_v54, %v1391_v12 }
 0x8a5   :  { %v1398_v18 = vadd.f32 %v1396_v17, %v1388_v13  ;;  %1404 = vrot.lane.b32.xlu1 %v1399_v14, %s1777_s21 }
 0x8a7   :  { %1402 = vrot.lane.b32.xlu0 %v1398_v18, %s1777_s21 }
 0x917   :  { %v1405_v9 = vpop.permute.xlu1 %1404 }
 0x918   :  { %v1409_v1 = vadd.f32 %v1405_v9, %v1922_v25 }
 0x919   :  { %v1403_v15 = vpop.permute.xlu0 %1402 }
 0x91a   :  { %1411 = vst.msk [vmem:[#allocation16 + $0x8] sm:$0xff] %vm558_vm0, %v1409_v1  ;;  %v1408_v42 = vadd.f32 %v1403_v15, %v1914_v21 }
 0x91c   :  { %1410 = vst.msk [vmem:[#allocation16] sm:$0xff] %vm558_vm0, %v1408_v42 }
 0x91d   :  { %1743 = shalt.err (!%p1740_p2)
}
 0x91e   :  { %1423 = dma.vmem_to_hbm [thread:$0]  %s1418_s27, 256, %s2106_s14, [#allocation4], %s1766_s18, %s1766_s18, %s1767_s19  }
 0x91f   :  { %1762 = dma.done.wait [#allocation4], 256  }
 0x920   :  { %1763 = vsyncadd [#allocation4], 4294967040 }
 0x921   :  { %1427 = vsyncpa [#allocation3], 1 }
 0x922   :  { %1428 = vsyncpa [#allocation6], 1 }
 0x923   :  { %1429 = vsyncpa [#allocation9], 1 }
 0x924   :  { %1430 = vsyncpa [#allocation12], 1 }
 0x925   :  { %1431 = vsyncpa [#allocation15], 1 }
 0x926   :  { %1432 = vsyncpa [#allocation4], 1 }

</bundles_post_ra>
